<compile_context>
chip_gen: v7x
topology: tpu7x:2x2x1
jax: 0.10.0
libtpu: 0.0.40
codegen_flags: <defaults>
</compile_context>

<pallas_src>
import functools
import numpy as np
import jax
import jax.numpy as jnp
from jax.experimental import pallas as pl
from jax.experimental.pallas import tpu as pltpu


# ------------------------------- kernel ------------------------------------

def _lrelu_agc_kernel(x_ref, o_ref, *, alpha, gain, clamp):
    v = x_ref[...]                                     # compute in storage dtype
    dt = v.dtype
    # Select the scale, then one multiply (2 VALU ops/elem).
    scale = jnp.where(v >= 0,
                      jnp.asarray(gain, dtype=dt),
                      jnp.asarray(alpha * gain, dtype=dt))
    y = v * scale
    if clamp is not None:                              # static Python branch
        y = jnp.clip(y, jnp.asarray(-clamp, dtype=dt), jnp.asarray(clamp, dtype=dt))
    o_ref[...] = y


def _round_up(a, m):
    return ((a + m - 1) // m) * m


def _sublane_multiple(dtype):
    # f32 -> 8, bf16/f16 -> 16, int8/fp8 -> 32.
    return max(8, 32 // jnp.dtype(dtype).itemsize)


# ------------------------------- wrapper ------------------------------------

def lrelu_agc(x, *, alpha=0.2, gain=1, clamp=None, block_rows=2048,
              donate_input=False):
    """Forward of PyTorch `lrelu_agc` for an arbitrarily shaped tensor.

    gain may be the string 'sqrt_2'.  Output dtype == input dtype.
    Set donate_input=True (with a donated jit arg) to alias output onto input.
    """
    gain_val = float(np.sqrt(2.0)) if gain == 'sqrt_2' else float(gain)
    clamp_val = float(clamp) * gain_val if clamp is not None else None

    orig_shape = x.shape
    dtype = x.dtype
    total = int(np.prod(orig_shape)) if orig_shape else 1
    itemsize = jnp.dtype(dtype).itemsize
    sub = _sublane_multiple(dtype)

    # Pick a lane width that divides `total` so no pad/slice is needed
    # (reshape is free).  Fall back to a minimal pad-to-128 otherwise.
    lane = None
    for cand in (512, 256, 128):
        if total % cand == 0:
            lane = cand
            break
    needs_pad = lane is None
    if needs_pad:
        lane = 128
    rows = pl.cdiv(total, lane)
    padded_total = rows * lane

    flat = x.reshape(-1)
    if needs_pad:
        flat = jnp.pad(flat, (0, padded_total - total))
    x2d = flat.reshape(rows, lane)

    # Block sizing: full-array block for tiny inputs; otherwise a
    # sublane-aligned block, capped at ~rows/2 so multi-TC chips (v7x) always
    # get >= 2 grid steps to split across cores.  The edge block (when rows is
    # not a multiple of block_rows) is masked by Pallas.
    if rows < sub:
        block_rows = rows                      # block == full array dims (allowed)
    else:
        half = _round_up(pl.cdiv(rows, 2), sub)
        block_rows = min(_round_up(block_rows, sub), max(half, sub))
    grid = (pl.cdiv(rows, block_rows),)

    flops_per_elem = 2 if clamp_val is None else 4

    out2d = pl.pallas_call(
        functools.partial(_lrelu_agc_kernel,
                          alpha=float(alpha), gain=gain_val, clamp=clamp_val),
        out_shape=jax.ShapeDtypeStruct((rows, lane), dtype),
        grid=grid,
        in_specs=[pl.BlockSpec((block_rows, lane), lambda i: (i, 0))],
        out_specs=pl.BlockSpec((block_rows, lane), lambda i: (i, 0)),
        compiler_params=pltpu.CompilerParams(
            dimension_semantics=("parallel",),
            vmem_limit_bytes=32 * 1024 * 1024),
        cost_estimate=pl.CostEstimate(
            flops=flops_per_elem * total,
            transcendentals=0,
            bytes_accessed=2 * padded_total * itemsize),
        input_output_aliases=({0: 0} if donate_input else {}),
    )(x2d)

    out = out2d.reshape(-1)
    if needs_pad:
        out = out[:total]
    return out.reshape(orig_shape)


# --------------------------------- main --------------------------------------

if __name__ == "__main__":
    key = jax.random.PRNGKey(0)
    x = jax.random.normal(key, (2, 4, 16, 16), jnp.float32) * 4.0

    g = float(np.sqrt(2.0))

    # MIGAN configuration: alpha=0.2, gain='sqrt_2', clamp=256.
    fwd = jax.jit(functools.partial(lrelu_agc, alpha=0.2, gain='sqrt_2', clamp=256))
    y = jax.block_until_ready(fwd(x))
    ref = jnp.clip(jnp.where(x >= 0, x, 0.2 * x) * g, -256.0 * g, 256.0 * g)
    assert y.shape == x.shape and y.dtype == x.dtype, (y.shape, y.dtype)
    assert bool(jnp.all(jnp.isfinite(y)))
    assert bool(jnp.allclose(y, ref, atol=1e-5, rtol=1e-5))

    # Default configuration: gain=1, clamp=None (no clipping applied).
    y2 = jax.block_until_ready(jax.jit(lrelu_agc)(x))
    ref2 = jnp.where(x >= 0, x, 0.2 * x)
    assert bool(jnp.allclose(y2, ref2, atol=1e-6, rtol=1e-6))

    # bf16 storage + bf16 compute path (v6e/v7x VALU; widened on v5e).
    xb = x.astype(jnp.bfloat16)
    y3 = jax.block_until_ready(fwd(xb))
    xb32 = xb.astype(jnp.float32)
    ref3 = jnp.clip(jnp.where(xb32 >= 0, xb32, 0.2 * xb32) * g,
                    -256.0 * g, 256.0 * g)
    assert y3.dtype == jnp.bfloat16
    assert bool(jnp.allclose(y3.astype(jnp.float32), ref3, atol=1e-2, rtol=1.5e-2))

    # Multi-block grid with a masked edge block (rows=40, block_rows=24).
    x4 = jax.random.normal(jax.random.PRNGKey(1), (2, 8, 32, 40), jnp.float32)
    y4 = jax.block_until_ready(fwd(x4))
    ref4 = jnp.clip(jnp.where(x4 >= 0, x4, 0.2 * x4) * g, -256.0 * g, 256.0 * g)
    assert bool(jnp.allclose(y4, ref4, atol=1e-5, rtol=1e-5))

    # Irregular size exercising the pad fallback (total=315, not /128).
    x5 = jax.random.normal(jax.random.PRNGKey(2), (5, 7, 9), jnp.float32)
    y5 = jax.block_until_ready(fwd(x5))
    ref5 = jnp.clip(jnp.where(x5 >= 0, x5, 0.2 * x5) * g, -256.0 * g, 256.0 * g)
    assert y5.shape == x5.shape
    assert bool(jnp.allclose(y5, ref5, atol=1e-5, rtol=1e-5))

    print("KERNEL_OK")
</pallas_src>

<mosaic_0001>
module attributes {stable_mosaic.version = 11 : i64} {
  func.func @_lrelu_agc_kernel(%arg0: i32, %arg1: memref<4x512xf32, #tpu.memory_space<vmem>>, %arg2: memref<4x512xf32, #tpu.memory_space<vmem>>) attributes {dimension_semantics = [#tpu.dimension_semantics<parallel>], iteration_bounds = array<i64: 1>, scalar_prefetch = 0 : i64, scratch_operands = 0 : i64, tpu.core_type = #tpu.core_type<tc>, window_params = [{transform_indices = @transform_0, window_bounds = array<i64: 4, 512>}, {transform_indices = @transform_1, window_bounds = array<i64: 4, 512>}]} {
    %c0 = arith.constant 0 : index
    %c0_0 = arith.constant 0 : index
    %0 = vector.load %arg1[%c0, %c0_0] : memref<4x512xf32, #tpu.memory_space<vmem>>, vector<4x512xf32>
    %cst = arith.constant 0.000000e+00 : f32
    %1 = vector.broadcast %cst : f32 to vector<4x512xf32>
    %2 = arith.cmpf oge, %0, %1 : vector<4x512xf32>
    %cst_1 = arith.constant 1.41421354 : f32
    %cst_2 = arith.constant 0.282842726 : f32
    %3 = vector.broadcast %cst_1 : f32 to vector<4x512xf32>
    %4 = vector.broadcast %cst_2 : f32 to vector<4x512xf32>
    %5 = arith.select %2, %3, %4 : vector<4x512xi1>, vector<4x512xf32>
    %6 = arith.mulf %0, %5 : vector<4x512xf32>
    %cst_3 = arith.constant -362.038666 : f32
    %cst_4 = arith.constant 362.038666 : f32
    %7 = vector.broadcast %cst_3 : f32 to vector<4x512xf32>
    %8 = arith.maximumf %7, %6 : vector<4x512xf32>
    %9 = vector.broadcast %cst_4 : f32 to vector<4x512xf32>
    %10 = arith.minimumf %9, %8 : vector<4x512xf32>
    %c0_5 = arith.constant 0 : index
    %c0_6 = arith.constant 0 : index
    %11 = vector.load %arg2[%c0_5, %c0_6] : memref<4x512xf32, #tpu.memory_space<vmem>>, vector<4x512xf32>
    tpu.vector_store %arg2[%c0_5, %c0_6], %10 {strides = array<i32>} : memref<4x512xf32, #tpu.memory_space<vmem>>, vector<4x512xf32>,
    return
  }
  func.func @transform_0(%arg0: i32) -> (i32, i32) {
    %c0_i32 = arith.constant 0 : i32
    %c0_i32_0 = arith.constant 0 : i32
    return %arg0, %c0_i32 : i32, i32
  }
  func.func @transform_1(%arg0: i32) -> (i32, i32) {
    %c0_i32 = arith.constant 0 : i32
    %c0_i32_0 = arith.constant 0 : i32
    return %arg0, %c0_i32 : i32, i32
  }
}

</mosaic_0001>

<bundles_post_ra>
// kernel: lrelu_agc.1
= control target key start
LH: loop header
LB: loop body
LE: loop exit
PB: predicated region body
PF: predicated region fallthrough
CT: control target
= control target key end

     0   :  { %v29_v2 = vmov 0.28284273   ;;  %s52_s0 = inlined_call_operand.vmem [shape: f32[4,512], index: 0, kind: input, shape index: {}]   ;;  %s53_s1 = inlined_call_operand.vmem [shape: f32[4,512], index: 1, kind: output, shape index: {}]  }
   0x1   :  { %v8_v0 = vld [vmem:[%s52_s0] sm:$0xff]  ;;  %v9_v1 = vld [vmem:[%s52_s0 + $0x8] sm:$0xff] }
   0x2   :  { %vm10_vm0 = vcmp.ge.f32.partialorder %v8_v0, 0.0  ;;  %vm11_vm1 = vcmp.ge.f32.partialorder %v9_v1, 0.0 }
   0x3   :  { %v12_v3 = vsel %vm10_vm0, 1.4142135, %v29_v2  ;;  %v13_v4 = vsel %vm11_vm1, 1.4142135, %v29_v2 }
   0x4   :  { %v14_v5 = vmul.f32 %v12_v3, %v8_v0  ;;  %v15_v6 = vmul.f32 %v13_v4, %v9_v1 }
   0x6   :  { %v26_v7 = vclamps-f32 %v14_v5, 362.03867  ;;  %v27_v8 = vclamps-f32 %v15_v6, 362.03867 }
   0x8   :  { %20 = vst [vmem:[%s53_s1] sm:$0xff] %v26_v7  ;;  %21 = vst [vmem:[%s53_s1 + $0x8] sm:$0xff] %v27_v8 }

</bundles_post_ra>
